<compile_context>
chip_gen: v7x
topology: tpu7x:2x2x1
jax: 0.10.0
libtpu: 0.0.40
codegen_flags: <defaults>
</compile_context>

<pallas_src>
import functools

import jax
import jax.numpy as jnp
from jax import lax
from jax.experimental import pallas as pl
from jax.experimental.pallas import tpu as pltpu

LN_EPS = 1e-5
LANE = 128
SUBLANE = 8
_SINGLE_BUF_WEIGHT_BYTES = 4 << 20   # single-buffer weights only when they matter


def _round_up(n, m):
    return ((n + m - 1) // m) * m


def _cdiv(a, b):
    return -(-a // b)


def _pad_to(a, shape):
    pads = [(0, s - d) for d, s in zip(a.shape, shape)]
    if all(p == (0, 0) for p in pads):
        return a
    return jnp.pad(a, pads)


def _probe_buffered():
    """Narrow, import-time capability probe for BlockSpec(pipeline_mode=Buffered(1))."""
    if not hasattr(pl, "Buffered"):
        return False
    try:
        pl.BlockSpec((SUBLANE, LANE), lambda i: (0, 0), pipeline_mode=pl.Buffered(1))
    except (TypeError, ValueError):
        return False
    return True


_HAS_BUFFERED1 = _probe_buffered()


def _vmem_cap_bytes():
    """~80% of per-TensorCore VMEM capacity (64 MiB on v7x, 128 MiB on v5e/v6e)."""
    try:
        cap = int(pltpu.get_tpu_info().vmem_capacity_bytes)
    except Exception:               # info query unavailable -> assume smallest (v7x)
        cap = 64 << 20
    return int(0.8 * cap)


def resblock_kernel(x_ref, gamma_ref, beta_ref,
                    w_in_ref, b_in_ref,
                    w_mid_ref, b_mid_ref,
                    w_out_ref, b_out_ref,
                    o_ref, *, true_in_dim):
    # ---- LayerNorm over the true (unpadded) feature width, two-pass variance ----
    # Padded feature columns of x/gamma/beta are zero, so sums over the padded axis
    # equal sums over the true axis for the mean; the deviation is explicitly masked
    # for the variance (the padded columns see -mean otherwise).
    x = x_ref[...].astype(jnp.float32)
    inv_n = jnp.float32(1.0 / true_in_dim)
    mean = jnp.sum(x, axis=-1, keepdims=True) * inv_n
    d = x - mean
    if true_in_dim != x.shape[-1]:
        col = lax.broadcasted_iota(jnp.int32, x.shape, 1)
        d = jnp.where(col < true_in_dim, d, 0.0)
    var = jnp.sum(d * d, axis=-1, keepdims=True) * inv_n
    xn = d * lax.rsqrt(var + LN_EPS)
    xn = xn * gamma_ref[...] + beta_ref[...]

    # ---- l_in (bf16 MXU operands, f32 accumulation); h kept in f32 for residual ----
    h = jnp.dot(xn.astype(jnp.bfloat16), w_in_ref[...],
                preferred_element_type=jnp.float32) + b_in_ref[...]

    # ---- l_mid -> ReLU -> l_out ----
    m = jnp.dot(h.astype(jnp.bfloat16), w_mid_ref[...],
                preferred_element_type=jnp.float32) + b_mid_ref[...]
    m = jnp.maximum(m, 0.0)
    o = jnp.dot(m.astype(jnp.bfloat16), w_out_ref[...],
                preferred_element_type=jnp.float32) + b_out_ref[...]

    # ---- residual add with the f32 copy of h ----
    o_ref[...] = (o + h).astype(o_ref.dtype)


def resblock_forward(x2d, params, *, row_tile=512):
    """x2d: (rows, in_dim). Returns (rows, out_dim) in x2d.dtype."""
    rows, in_dim = x2d.shape
    out_dim = params["w_in"].shape[1]
    out_dtype = x2d.dtype

    # Lane-dense (multiple-of-128) feature axes.
    in_p = _round_up(in_dim, LANE)
    out_p = _round_up(out_dim, LANE)

    x_bytes = jnp.dtype(x2d.dtype).itemsize
    out_bytes = jnp.dtype(out_dtype).itemsize

    # ---- adaptive row tiling ----
    # Small batches: don't pad a handful of rows up to a huge tile.
    row_tile = max(SUBLANE, min(row_tile, _round_up(rows, SUBLANE)))
    # Keep >= 2 grid steps when possible so v7x's second TensorCore gets work.
    if rows > SUBLANE and _cdiv(rows, row_tile) < 2:
        row_tile = _round_up(_cdiv(rows, 2), SUBLANE)

    # ---- VMEM budget (per TensorCore) ----
    weight_bytes = ((in_p * out_p + 2 * out_p * out_p) * 2      # bf16 w_in/w_mid/w_out
                    + (2 * in_p + 3 * out_p) * 4)               # f32 gamma/beta/biases
    use_single_buf = _HAS_BUFFERED1 and weight_bytes > _SINGLE_BUF_WEIGHT_BYTES
    weight_buffers = 1 if use_single_buf else 2
    cap = _vmem_cap_bytes()

    def est(rt):
        tiles = 2 * rt * (in_p * x_bytes + out_p * out_bytes)   # double-buffered x/out
        inter = rt * (6 * in_p + 16 * out_p)                    # xn(f32+bf16), h/m/o f32, h/m bf16
        return int(1.2 * (weight_buffers * weight_bytes + tiles + inter))

    # Shrink the row tile (not below 64) if the estimate exceeds the per-TC cap.
    while row_tile > 64 and est(row_tile) > cap:
        row_tile = max(64, _round_up(row_tile // 2, SUBLANE))

    rows_p = _round_up(rows, row_tile)
    grid = (rows_p // row_tile,)
    vmem_limit = int(min(max(est(row_tile), 32 << 20), cap))

    # ---- pad & cast operands (padded weight rows/cols are zero -> mathematically inert)
    xp = _pad_to(x2d, (rows_p, in_p))
    gamma = _pad_to(params["gamma"].astype(jnp.float32), (1, in_p))
    beta = _pad_to(params["beta"].astype(jnp.float32), (1, in_p))
    w_in = _pad_to(params["w_in"], (in_p, out_p)).astype(jnp.bfloat16)
    w_mid = _pad_to(params["w_mid"], (out_p, out_p)).astype(jnp.bfloat16)
    w_out = _pad_to(params["w_out"], (out_p, out_p)).astype(jnp.bfloat16)
    b_in = _pad_to(params["b_in"].astype(jnp.float32), (1, out_p))
    b_mid = _pad_to(params["b_mid"].astype(jnp.float32), (1, out_p))
    b_out = _pad_to(params["b_out"].astype(jnp.float32), (1, out_p))

    def const_spec(shape):
        # Grid-invariant blocks (weights / biases / LN params).
        if use_single_buf:
            return pl.BlockSpec(shape, lambda i: (0, 0), pipeline_mode=pl.Buffered(1))
        return pl.BlockSpec(shape, lambda i: (0, 0))

    row_map = lambda i: (i, 0)
    kernel = functools.partial(resblock_kernel, true_in_dim=in_dim)

    out_padded = pl.pallas_call(
        kernel,
        out_shape=jax.ShapeDtypeStruct((rows_p, out_p), out_dtype),
        grid=grid,
        in_specs=[
            pl.BlockSpec((row_tile, in_p), row_map),   # x rows (double-buffered)
            const_spec((1, in_p)),                     # ln gamma
            const_spec((1, in_p)),                     # ln beta
            const_spec((in_p, out_p)),                 # w_in (bf16)
            const_spec((1, out_p)),                    # b_in
            const_spec((out_p, out_p)),                # w_mid (bf16)
            const_spec((1, out_p)),                    # b_mid
            const_spec((out_p, out_p)),                # w_out (bf16)
            const_spec((1, out_p)),                    # b_out
        ],
        out_specs=pl.BlockSpec((row_tile, out_p), row_map),
        compiler_params=pltpu.CompilerParams(
            dimension_semantics=("parallel",),
            vmem_limit_bytes=vmem_limit),
    )(xp, gamma, beta, w_in, b_in, w_mid, b_mid, w_out, b_out)

    return out_padded[:rows, :out_dim]


def init_params(key, in_dim, out_dim):
    """Deterministic synthetic init (shapes/semantics match the PyTorch module)."""
    ks = jax.random.split(key, 6)

    def lin(kw, kb, fan_in, fan_out):
        bound = 1.0 / jnp.sqrt(fan_in)
        w = jax.random.uniform(kw, (fan_in, fan_out), jnp.float32, -bound, bound)
        b = jax.random.uniform(kb, (1, fan_out), jnp.float32, -bound, bound)
        return w, b

    w_in, b_in = lin(ks[0], ks[1], in_dim, out_dim)
    w_mid, b_mid = lin(ks[2], ks[3], out_dim, out_dim)
    w_out, b_out = lin(ks[4], ks[5], out_dim, out_dim)
    return dict(
        gamma=jnp.ones((1, in_dim), jnp.float32),   # LayerNorm weight init = 1
        beta=jnp.zeros((1, in_dim), jnp.float32),   # LayerNorm bias   init = 0
        w_in=w_in, b_in=b_in,
        w_mid=w_mid, b_mid=b_mid,
        w_out=w_out, b_out=b_out,
    )


def resblock_ref(x2d, p):
    """Pure-JAX f32 reference for correctness check."""
    mean = jnp.mean(x2d, axis=-1, keepdims=True)
    var = jnp.mean((x2d - mean) ** 2, axis=-1, keepdims=True)
    xn = (x2d - mean) / jnp.sqrt(var + LN_EPS) * p["gamma"] + p["beta"]
    h = xn @ p["w_in"] + p["b_in"]
    m = jnp.maximum(h @ p["w_mid"] + p["b_mid"], 0.0)
    return m @ p["w_out"] + p["b_out"] + h


if __name__ == "__main__":
    batch, seq, in_dim, out_dim = 2, 8, 32, 32
    key = jax.random.PRNGKey(0)
    kx, kp = jax.random.split(key)

    x = jax.random.normal(kx, (batch, seq, in_dim), jnp.float32)
    params = init_params(kp, in_dim, out_dim)

    x2d = x.reshape(batch * seq, in_dim)
    out2d = resblock_forward(x2d, params)
    out = out2d.reshape(batch, seq, out_dim)
    jax.block_until_ready(out)

    ref = resblock_ref(x2d, params).reshape(batch, seq, out_dim)
    max_err = float(jnp.max(jnp.abs(out - ref)))
    # bf16 MXU operands with f32 accumulation -> relaxed tolerance vs f32 reference.
    assert jnp.allclose(out, ref, atol=3e-2, rtol=3e-2), \
        f"mismatch vs reference (max abs err {max_err})"

    print("KERNEL_OK")
</pallas_src>

<mosaic_0001>
module attributes {stable_mosaic.version = 11 : i64} {
  func.func @resblock_kernel(%arg0: i32, %arg1: memref<8x128xf32, #tpu.memory_space<vmem>>, %arg2: memref<1x128xf32, #tpu.memory_space<vmem>>, %arg3: memref<1x128xf32, #tpu.memory_space<vmem>>, %arg4: memref<128x128xbf16, #tpu.memory_space<vmem>>, %arg5: memref<1x128xf32, #tpu.memory_space<vmem>>, %arg6: memref<128x128xbf16, #tpu.memory_space<vmem>>, %arg7: memref<1x128xf32, #tpu.memory_space<vmem>>, %arg8: memref<128x128xbf16, #tpu.memory_space<vmem>>, %arg9: memref<1x128xf32, #tpu.memory_space<vmem>>, %arg10: memref<8x128xf32, #tpu.memory_space<vmem>>) attributes {dimension_semantics = [#tpu.dimension_semantics<parallel>], iteration_bounds = array<i64: 2>, scalar_prefetch = 0 : i64, scratch_operands = 0 : i64, tpu.core_type = #tpu.core_type<tc>, window_params = [{transform_indices = @transform_0, window_bounds = array<i64: 8, 128>}, {pipeline_mode = #tpu.pipeline_mode<synchronous>, transform_indices = @transform_1, window_bounds = array<i64: 1, 128>}, {pipeline_mode = #tpu.pipeline_mode<synchronous>, transform_indices = @transform_2, window_bounds = array<i64: 1, 128>}, {pipeline_mode = #tpu.pipeline_mode<synchronous>, transform_indices = @transform_3, window_bounds = array<i64: 128, 128>}, {pipeline_mode = #tpu.pipeline_mode<synchronous>, transform_indices = @transform_4, window_bounds = array<i64: 1, 128>}, {pipeline_mode = #tpu.pipeline_mode<synchronous>, transform_indices = @transform_5, window_bounds = array<i64: 128, 128>}, {pipeline_mode = #tpu.pipeline_mode<synchronous>, transform_indices = @transform_6, window_bounds = array<i64: 1, 128>}, {pipeline_mode = #tpu.pipeline_mode<synchronous>, transform_indices = @transform_7, window_bounds = array<i64: 128, 128>}, {pipeline_mode = #tpu.pipeline_mode<synchronous>, transform_indices = @transform_8, window_bounds = array<i64: 1, 128>}, {transform_indices = @transform_9, window_bounds = array<i64: 8, 128>}]} {
    %c0 = arith.constant 0 : index
    %c0_0 = arith.constant 0 : index
    %0 = vector.load %arg1[%c0, %c0_0] : memref<8x128xf32, #tpu.memory_space<vmem>>, vector<8x128xf32>
    %cst = arith.constant dense<0.000000e+00> : vector<8xf32>
    %1 = vector.multi_reduction <add>, %0, %cst [1] : vector<8x128xf32> to vector<8xf32>
    %2 = vector.shape_cast %1 : vector<8xf32> to vector<8x1xf32>
    %cst_1 = arith.constant 3.125000e-02 : f32
    %3 = vector.broadcast %cst_1 : f32 to vector<8x1xf32>
    %4 = arith.mulf %2, %3 : vector<8x1xf32>
    %5 = vector.broadcast %4 : vector<8x1xf32> to vector<8x128xf32>
    %6 = arith.subf %0, %5 : vector<8x128xf32>
    %7 = tpu.iota {dimensions = array<i32: 1>} : vector<8x128xi32>
    %c32_i32 = arith.constant 32 : i32
    %8 = vector.broadcast %c32_i32 : i32 to vector<8x128xi32>
    %9 = arith.cmpi slt, %7, %8 : vector<8x128xi32>
    %cst_2 = arith.constant 0.000000e+00 : f32
    %10 = vector.broadcast %cst_2 : f32 to vector<8x128xf32>
    %11 = arith.select %9, %6, %10 : vector<8x128xi1>, vector<8x128xf32>
    %12 = arith.mulf %11, %11 : vector<8x128xf32>
    %cst_3 = arith.constant dense<0.000000e+00> : vector<8xf32>
    %13 = vector.multi_reduction <add>, %12, %cst_3 [1] : vector<8x128xf32> to vector<8xf32>
    %14 = vector.shape_cast %13 : vector<8xf32> to vector<8x1xf32>
    %cst_4 = arith.constant 3.125000e-02 : f32
    %15 = vector.broadcast %cst_4 : f32 to vector<8x1xf32>
    %16 = arith.mulf %14, %15 : vector<8x1xf32>
    %cst_5 = arith.constant 9.99999974E-6 : f32
    %17 = vector.broadcast %cst_5 : f32 to vector<8x1xf32>
    %18 = arith.addf %16, %17 : vector<8x1xf32>
    %19 = math.rsqrt %18 : vector<8x1xf32>
    %20 = vector.broadcast %19 : vector<8x1xf32> to vector<8x128xf32>
    %21 = arith.mulf %11, %20 : vector<8x128xf32>
    %c0_6 = arith.constant 0 : index
    %c0_7 = arith.constant 0 : index
    %22 = vector.load %arg2[%c0_6, %c0_7] : memref<1x128xf32, #tpu.memory_space<vmem>>, vector<1x128xf32>
    %23 = vector.broadcast %22 : vector<1x128xf32> to vector<8x128xf32>
    %24 = arith.mulf %21, %23 : vector<8x128xf32>
    %c0_8 = arith.constant 0 : index
    %c0_9 = arith.constant 0 : index
    %25 = vector.load %arg3[%c0_8, %c0_9] : memref<1x128xf32, #tpu.memory_space<vmem>>, vector<1x128xf32>
    %26 = vector.broadcast %25 : vector<1x128xf32> to vector<8x128xf32>
    %27 = arith.addf %24, %26 : vector<8x128xf32>
    %28 = arith.truncf %27 : vector<8x128xf32> to vector<8x128xbf16>
    %c0_10 = arith.constant 0 : index
    %c0_11 = arith.constant 0 : index
    %29 = vector.load %arg4[%c0_10, %c0_11] : memref<128x128xbf16, #tpu.memory_space<vmem>>, vector<128x128xbf16>
    %cst_12 = arith.constant dense<0.000000e+00> : vector<8x128xf32>
    %30 = tpu.matmul %28, %29, %cst_12 {dimension_numbers = #tpu.dot_dimension_numbers<[1], [0], [0], [1], [0, 0, 1, 1], [], []>} : vector<8x128xbf16>, vector<128x128xbf16>, vector<8x128xf32> -> vector<8x128xf32>
    %c0_13 = arith.constant 0 : index
    %c0_14 = arith.constant 0 : index
    %31 = vector.load %arg5[%c0_13, %c0_14] : memref<1x128xf32, #tpu.memory_space<vmem>>, vector<1x128xf32>
    %32 = vector.broadcast %31 : vector<1x128xf32> to vector<8x128xf32>
    %33 = arith.addf %30, %32 : vector<8x128xf32>
    %34 = arith.truncf %33 : vector<8x128xf32> to vector<8x128xbf16>
    %c0_15 = arith.constant 0 : index
    %c0_16 = arith.constant 0 : index
    %35 = vector.load %arg6[%c0_15, %c0_16] : memref<128x128xbf16, #tpu.memory_space<vmem>>, vector<128x128xbf16>
    %cst_17 = arith.constant dense<0.000000e+00> : vector<8x128xf32>
    %36 = tpu.matmul %34, %35, %cst_17 {dimension_numbers = #tpu.dot_dimension_numbers<[1], [0], [0], [1], [0, 0, 1, 1], [], []>} : vector<8x128xbf16>, vector<128x128xbf16>, vector<8x128xf32> -> vector<8x128xf32>
    %c0_18 = arith.constant 0 : index
    %c0_19 = arith.constant 0 : index
    %37 = vector.load %arg7[%c0_18, %c0_19] : memref<1x128xf32, #tpu.memory_space<vmem>>, vector<1x128xf32>
    %38 = vector.broadcast %37 : vector<1x128xf32> to vector<8x128xf32>
    %39 = arith.addf %36, %38 : vector<8x128xf32>
    %cst_20 = arith.constant 0.000000e+00 : f32
    %40 = vector.broadcast %cst_20 : f32 to vector<8x128xf32>
    %41 = arith.maximumf %39, %40 : vector<8x128xf32>
    %42 = arith.truncf %41 : vector<8x128xf32> to vector<8x128xbf16>
    %c0_21 = arith.constant 0 : index
    %c0_22 = arith.constant 0 : index
    %43 = vector.load %arg8[%c0_21, %c0_22] : memref<128x128xbf16, #tpu.memory_space<vmem>>, vector<128x128xbf16>
    %cst_23 = arith.constant dense<0.000000e+00> : vector<8x128xf32>
    %44 = tpu.matmul %42, %43, %cst_23 {dimension_numbers = #tpu.dot_dimension_numbers<[1], [0], [0], [1], [0, 0, 1, 1], [], []>} : vector<8x128xbf16>, vector<128x128xbf16>, vector<8x128xf32> -> vector<8x128xf32>
    %c0_24 = arith.constant 0 : index
    %c0_25 = arith.constant 0 : index
    %45 = vector.load %arg9[%c0_24, %c0_25] : memref<1x128xf32, #tpu.memory_space<vmem>>, vector<1x128xf32>
    %46 = vector.broadcast %45 : vector<1x128xf32> to vector<8x128xf32>
    %47 = arith.addf %44, %46 : vector<8x128xf32>
    %48 = arith.addf %47, %33 : vector<8x128xf32>
    %c0_26 = arith.constant 0 : index
    %c0_27 = arith.constant 0 : index
    %49 = vector.load %arg10[%c0_26, %c0_27] : memref<8x128xf32, #tpu.memory_space<vmem>>, vector<8x128xf32>
    tpu.vector_store %arg10[%c0_26, %c0_27], %48 {strides = array<i32>} : memref<8x128xf32, #tpu.memory_space<vmem>>, vector<8x128xf32>,
    return
  }
  func.func @transform_0(%arg0: i32) -> (i32, i32) {
    %c0_i32 = arith.constant 0 : i32
    %c0_i32_0 = arith.constant 0 : i32
    return %arg0, %c0_i32 : i32, i32
  }
  func.func @transform_1(%arg0: i32) -> (i32, i32) {
    %c0_i32 = arith.constant 0 : i32
    %c0_i32_0 = arith.constant 0 : i32
    %c0_i32_1 = arith.constant 0 : i32
    return %c0_i32, %c0_i32_0 : i32, i32
  }
  func.func @transform_2(%arg0: i32) -> (i32, i32) {
    %c0_i32 = arith.constant 0 : i32
    %c0_i32_0 = arith.constant 0 : i32
    %c0_i32_1 = arith.constant 0 : i32
    return %c0_i32, %c0_i32_0 : i32, i32
  }
  func.func @transform_3(%arg0: i32) -> (i32, i32) {
    %c0_i32 = arith.constant 0 : i32
    %c0_i32_0 = arith.constant 0 : i32
    %c0_i32_1 = arith.constant 0 : i32
    return %c0_i32, %c0_i32_0 : i32, i32
  }
  func.func @transform_4(%arg0: i32) -> (i32, i32) {
    %c0_i32 = arith.constant 0 : i32
    %c0_i32_0 = arith.constant 0 : i32
    %c0_i32_1 = arith.constant 0 : i32
    return %c0_i32, %c0_i32_0 : i32, i32
  }
  func.func @transform_5(%arg0: i32) -> (i32, i32) {
    %c0_i32 = arith.constant 0 : i32
    %c0_i32_0 = arith.constant 0 : i32
    %c0_i32_1 = arith.constant 0 : i32
    return %c0_i32, %c0_i32_0 : i32, i32
  }
  func.func @transform_6(%arg0: i32) -> (i32, i32) {
    %c0_i32 = arith.constant 0 : i32
    %c0_i32_0 = arith.constant 0 : i32
    %c0_i32_1 = arith.constant 0 : i32
    return %c0_i32, %c0_i32_0 : i32, i32
  }
  func.func @transform_7(%arg0: i32) -> (i32, i32) {
    %c0_i32 = arith.constant 0 : i32
    %c0_i32_0 = arith.constant 0 : i32
    %c0_i32_1 = arith.constant 0 : i32
    return %c0_i32, %c0_i32_0 : i32, i32
  }
  func.func @transform_8(%arg0: i32) -> (i32, i32) {
    %c0_i32 = arith.constant 0 : i32
    %c0_i32_0 = arith.constant 0 : i32
    %c0_i32_1 = arith.constant 0 : i32
    return %c0_i32, %c0_i32_0 : i32, i32
  }
  func.func @transform_9(%arg0: i32) -> (i32, i32) {
    %c0_i32 = arith.constant 0 : i32
    %c0_i32_0 = arith.constant 0 : i32
    return %arg0, %c0_i32 : i32, i32
  }
}

</mosaic_0001>

<bundles_post_ra>
// kernel: tpu_custom_call.1
= control target key start
LH: loop header
LB: loop body
LE: loop exit
PB: predicated region body
PF: predicated region fallthrough
CT: control target
= control target key end

     0   :  { %s1679_s0 = inlined_call_operand.hbm [shape: f32[16,128], index: 0, kind: input, shape index: {}]   ;;  %s1680_s1 = inlined_call_operand.vmem [shape: f32[1,128], index: 1, kind: input, shape index: {}]   ;;  %s1681_s2 = inlined_call_operand.vmem [shape: f32[1,128], index: 2, kind: input, shape index: {}]   ;;  %s1682_s3 = inlined_call_operand.hbm [shape: bf16[128,128], index: 3, kind: input, shape index: {}]   ;;  %s1683_s4 = inlined_call_operand.vmem [shape: f32[1,128], index: 4, kind: input, shape index: {}]   ;;  %s1684_s5 = inlined_call_operand.hbm [shape: bf16[128,128], index: 5, kind: input, shape index: {}]   ;;  %s1685_s6 = inlined_call_operand.vmem [shape: f32[1,128], index: 6, kind: input, shape index: {}]   ;;  %s1686_s7 = inlined_call_operand.hbm [shape: bf16[128,128], index: 7, kind: input, shape index: {}]   ;;  %s1687_s8 = inlined_call_operand.vmem [shape: f32[1,128], index: 8, kind: input, shape index: {}]   ;;  %s1688_s9 = inlined_call_operand.hbm [shape: f32[16,128], index: 9, kind: output, shape index: {}]  }
   0x1   :  { %1695 = sst [smem:[#allocation17_spill]] %s1688_s9 }
   0x2   :  { %14 = vsyncpa [#allocation3], 0 }
   0x3   :  { %16 = vsyncpa [#allocation3 + $0x1], 0 }
   0x4   :  { %17 = vsyncpa [#allocation6], 0 }
   0x5   :  { %18 = vsyncpa [#allocation9], 0 }
   0x6   :  { %19 = vsyncpa [#allocation4], 0 }
   0x7   :  { %21 = vsyncpa [#allocation4 + $0x1], 0  ;;  %s1367_s30 = smov 0   ;;  %s1369_s10 = smov 0  }
   0x8   :  { %s1371_s11 = smov 0   ;;  %s1373_s12 = smov 0  }
   0x9 LB: > { %1696 = sst [smem:[#allocation15_spill]] %s1294_s30  ;;  %s1388_s13 = sadd.s32 4294967295, %s1306_s12   ;;  %s1306_s12 = sphi %s1373_s12, %s1720_s12   ;;  %s1302_s11 = sphi %s1371_s11, %s1719_s11   ;;  %s1298_s10 = sphi %s1369_s10, %s1718_s10   ;;  %s1294_s30 = sphi %s1367_s30, %s1717_s30  }
   0xa   : > { %s877_s14 = sadd.s32 4294967294, %s1306_s12   ;;  %p47_p0 = scmp.ne.s32.totalorder %s1298_s10, %s1294_s30 }
   0xb   : > { %p1689_p1 = scmp.eq.s32.totalorder %s1388_s13, 0  ;;  %p245_p3 = scmp.eq.s32.totalorder %s877_s14, 1 }
   0xc   : > { %p878_p5 = scmp.ge.s32.totalorder %s1306_s12, 1  ;;  %p252_p7 = scmp.lt.s32.totalorder %s1306_s12, 3 }
   0xd   : > { %p1397_p4 = por %p1689_p1, %p47_p0  ;;  %p1402_p6 = por %p245_p3, %p47_p0 }
   0xe   : > { %p1407_p8 = pnand %p878_p5, %p252_p7  ;;  %s1308_s18 = smov [#allocation5]  }
   0xf   : > { %s1697_s15 = scalar_select %p1397_p4, 1, 0 }
  0x10   : > { %s1698_s16 = scalar_select %p1402_p6, 1, 0 }
  0x11   : > { %s1700_s17 = scalar_select %p1407_p8, 1, 0 }
  0x12   : > { %1699 = sst [smem:[#allocation16_spill]] %s1698_s16  ;;  %s270_s19 = sshll.u32 %s1308_s18, 4  ;;  %s1411_s19 = int_to_ptr.vmem [resolvable:$true] %s270_s19 }
  0x13   : > { %p1027_p9 = pneg %p1407_p8  ;;  %s1309_s21 = smov [#allocation7]  }
  0x14   : > { %s286_s22 = sshll.u32 %s1309_s21, 4  ;;  %s1310_s23 = smov [#allocation8]   ;;  %s1422_s22 = int_to_ptr.vmem [resolvable:$true] %s286_s22 }
  0x15   : > { %p1418_p11 = pnand %p1027_p9, %p1689_p1  ;;  %s1424_s24 = sshll.u32 %s1310_s23, 4  ;;  %s303_s24 = int_to_ptr.vmem [resolvable:$true] %s1424_s24 }
  0x16   : > { %s1118_s27 = scalar_lea.hbm %s1682_s3, 1024 }
  0x17   : > { %p1119_p12 = scmp.ne.s32.totalorder %s1682_s3, %s1118_s27  ;;  %p1434_p13 = pneg %p1418_p11 }
  0x18   : > { %p1125_p5 = scmp.lt.u32.totalorder %s1118_s27, %s1682_s3 }
  0x19   : > { %p1121_p0 = pnand %p1434_p13, %p1119_p12 }
  0x1b   : > { %p1122_p3 = pneg %p1121_p0 }
  0x1d   : > { %p1127_p7 = pnand %p1125_p5, %p1122_p3 }
  0x1f   : > { %1130 = shalt.err (!%p1127_p7)
}
  0x20   : > { %s1131_s23 = scalar_lea.vmem %s1411_s19, 1024  ;;  %p1139_p2 = scmp.lt.s32.totalorder %s1411_s19, %s1411_s19 }
  0x21   : > { %p1132_p9 = scmp.ne.s32.totalorder %s1411_s19, %s1131_s23  ;;  %p1140_p6 = scmp.lt.s32.totalorder %s1131_s23, %s1131_s23 }
  0x23   : > { %p1134_p10 = pnand %p1132_p9, %p1434_p13  ;;  %p1141_p12 = por %p1140_p6, %p1139_p2 }
  0x25   : > { %p1135_p1 = pneg %p1134_p10 }
  0x27   : > { %p1142_p0 = pnand %p1141_p12, %p1135_p1 }
  0x29   : > { %1145 = shalt.err (!%p1142_p0)
}
  0x2a   : > { %s1311_s25 = smov 64   ;;  %s1312_s26 = smov 4  }
  0x2b   : > { %1030 = dma.hbm_to_vmem [thread:$0]  (!%p1418_p11), %s1682_s3, 1024, %s1411_s19, [#allocation6], %s1311_s25, %s1311_s25, %s1312_s26  }
  0x2c   : > { %s1146_s21 = scalar_lea.hbm %s1684_s5, 1024 }
  0x2d   : > { %p1147_p1 = scmp.ne.s32.totalorder %s1684_s5, %s1146_s21  ;;  %p1153_p10 = scmp.lt.u32.totalorder %s1146_s21, %s1684_s5 }
  0x2f   : > { %p1149_p2 = pnand %p1147_p1, %p1434_p13 }
  0x31   : > { %p1150_p6 = pneg %p1149_p2 }
  0x33   : > { %p1155_p3 = pnand %p1153_p10, %p1150_p6 }
  0x35   : > { %1158 = shalt.err (!%p1155_p3)
}
  0x36   : > { %s1159_s19 = scalar_lea.vmem %s1422_s22, 1024  ;;  %p1167_p12 = scmp.lt.s32.totalorder %s1422_s22, %s1422_s22 }
  0x37   : > { %p1160_p5 = scmp.ne.s32.totalorder %s1422_s22, %s1159_s19  ;;  %p1168_p0 = scmp.lt.s32.totalorder %s1159_s19, %s1159_s19 }
  0x39   : > { %p1162_p7 = pnand %p1160_p5, %p1434_p13  ;;  %p1169_p1 = por %p1168_p0, %p1167_p12 }
  0x3b   : > { %p1163_p9 = pneg %p1162_p7 }
  0x3d   : > { %p1170_p2 = pnand %p1169_p1, %p1163_p9 }
  0x3f   : > { %1173 = shalt.err (!%p1170_p2)
}
  0x40   : > { %1033 = dma.hbm_to_vmem [thread:$0]  (!%p1418_p11), %s1684_s5, 1024, %s1422_s22, [#allocation6], %s1311_s25, %s1311_s25, %s1312_s26  }
  0x41   : > { %s1174_s28 = scalar_lea.hbm %s1686_s7, 1024 }
  0x42   : > { %p1175_p6 = scmp.ne.s32.totalorder %s1686_s7, %s1174_s28  ;;  %p1181_p5 = scmp.lt.u32.totalorder %s1174_s28, %s1686_s7 }
  0x44   : > { %p1177_p10 = pnand %p1175_p6, %p1434_p13 }
  0x46   : > { %p1178_p3 = pneg %p1177_p10 }
  0x48   : > { %p1183_p7 = pnand %p1181_p5, %p1178_p3 }
  0x4a   : > { %1186 = shalt.err (!%p1183_p7)
}
  0x4b   : > { %s1187_s19 = scalar_lea.vmem %s303_s24, 1024  ;;  %p1195_p1 = scmp.lt.s32.totalorder %s303_s24, %s303_s24 }
  0x4c   : > { %p1188_p9 = scmp.ne.s32.totalorder %s303_s24, %s1187_s19  ;;  %p1196_p2 = scmp.lt.s32.totalorder %s1187_s19, %s1187_s19 }
  0x4e   : > { %p1190_p12 = pnand %p1188_p9, %p1434_p13  ;;  %p1197_p4 = por %p1196_p2, %p1195_p1 }
  0x50   : > { %p1191_p0 = pneg %p1190_p12 }
  0x52   : > { %p1198_p8 = pnand %p1197_p4, %p1191_p0 }
  0x54   : > { %1201 = shalt.err (!%p1198_p8)
}
  0x55   : > { %1036 = dma.hbm_to_vmem [thread:$0]  (!%p1418_p11), %s1686_s7, 1024, %s303_s24, [#allocation9], %s1311_s25, %s1311_s25, %s1312_s26  }
  0x56   : > { %s1507_s14 = sadd.s32 1, %s1306_s12   ;;  %s34_s30 = sadd.s32 1, %s1302_s11 }
  0x57   : > { %s31_s20 = ssub.s32 %s1306_s12, %s1507_s14  ;;  %p41_p8 = scmp.ne.s32.totalorder %s1302_s11, %s1298_s10 }
  0x58   : > { %p32_p4 = scmp.eq.s32.totalorder %s31_s20, 0  ;;  %p42_p13 = scmp.eq.s32.totalorder %s1306_s12, 0 }
  0x59   : > { %p1048_p6 = scmp.lt.s32.totalorder %s1306_s12, 2  ;;  %p1703_p3 = scmp.eq.s32.totalorder %s1388_s13, 1 }
  0x5a   : > { %s1517_s16 = scalar_select %p32_p4, %s1302_s11, %s34_s30  }
  0x5b   : > { %p43_p10 = por %p42_p13, %p41_p8  ;;  %p1521_p5 = por %p1703_p3, %p41_p8 }
  0x5c   : > { %s319_s28 = sand.u32 1, %s1302_s11   ;;  %s884_s29 = sshll.u32 %s1306_s12, 7 }
  0x5d   : > { %s883_s24 = sshll.u32 %s319_s28, 3  ;;  %s1530_s18 = scalar_lea.hbm %s1679_s0, %s884_s29 }
  0x5e   : > { %s323_s21 = scalar_lea.vmem [#allocation2], %s883_s24  ;;  %p1532_p11 = pnand %p1048_p6, %p43_p10 }
  0x5f   : > { %s330_s23 = sshll.u32 %s323_s21, 4  ;;  %s320_s22 = scalar_lea.sflag [#allocation3], %s319_s28  ;;  %s1536_s23 = int_to_ptr.vmem [resolvable:$true] %s330_s23 }
  0x60   : > { %s1202_s9 = scalar_lea.hbm %s1530_s18, 128  ;;  %p1204_p9 = pneg %p1532_p11 }
  0x61   : > { %p1203_p7 = scmp.ne.s32.totalorder %s1530_s18, %s1202_s9  ;;  %s1207_s29 = scalar_lea.hbm %s1679_s0, 256 }
  0x62   : > { %p1208_p1 = scmp.lt.u32.totalorder %s1530_s18, %s1679_s0  ;;  %p1209_p2 = scmp.lt.u32.totalorder %s1207_s29, %s1202_s9 }
  0x63   : > { %p1205_p12 = pnand %p1204_p9, %p1203_p7  ;;  %p1211_p8 = scmp.lt.u32.totalorder %s1202_s9, %s1530_s18 }
  0x64   : > { %p1210_p4 = por %p1209_p2, %p1208_p1 }
  0x65   : > { %p1206_p0 = pneg %p1205_p12 }
  0x66   : > { %p1212_p13 = por %p1211_p8, %p1210_p4 }
  0x68   : > { %p1213_p6 = pnand %p1212_p13, %p1206_p0 }
  0x6a   : > { %1216 = shalt.err (!%p1213_p6)
}
  0x6b   : > { %s1217_s28 = scalar_lea.vmem %s1536_s23, 128  ;;  %s1313_s26 = smov [#allocation2]  }
  0x6c   : > { %p1218_p10 = scmp.ne.s32.totalorder %s1536_s23, %s1217_s28  ;;  %s1222_s21 = sshll.u32 %s1313_s26, 4  ;;  %s1223_s21 = int_to_ptr.vmem [resolvable:$false] %s1222_s21 }
  0x6d   : > { %s1224_s20 = scalar_lea.vmem %s1223_s21, 256  ;;  %p1225_p12 = scmp.lt.s32.totalorder %s1536_s23, %s1223_s21 }
  0x6e   : > { %p1220_p3 = pnand %p1218_p10, %p1204_p9  ;;  %p1226_p1 = scmp.lt.s32.totalorder %s1224_s20, %s1217_s28 }
  0x70   : > { %p1221_p7 = pneg %p1220_p3  ;;  %p1227_p2 = por %p1226_p1, %p1225_p12 }
  0x72   : > { %p1228_p4 = pnand %p1227_p2, %p1221_p7 }
  0x74   : > { %1231 = shalt.err (!%p1228_p4)
}
  0x75   : > { %1040 = dma.hbm_to_vmem [thread:$0]  (!%p1532_p11), %s1530_s18, 128, %s1536_s23, %s320_s22  }
  0x76   : > { %p1706_p0 = scmp.ne.s32.totalorder %s1700_s17, 0 }
  0x77   : > { %s1566_s9 = sand.u32 (!%p1706_p0), 1, %s1298_s10   ;;  %p1707_p9 = scmp.ne.s32.totalorder (!%p1706_p0), %s1697_s15, 0 }
  0x78   : > { %339 = sbr.rel (%p1706_p0) target bundleno = 1114 (0x45a), region = 56  ;;  %s886_s30 = sshll.u32 (!%p1706_p0), %s1566_s9, 3 }
  0x79   : > { %s342_s29 = scalar_lea.sflag (!%p1706_p0), [#allocation3], %s1566_s9  ;;  %s345_s24 = scalar_lea.vmem (!%p1706_p0), [#allocation2], %s886_s30 }
  0x7f   : > { %1277 = dma.done.wait (%p1707_p9), %s342_s29, 128  }
  0x80   : > { %1279 = vsyncadd (%p1707_p9), %s342_s29, 4294967168  ;;  %p1708_p11 = scmp.eq.s32.totalorder %s1388_s13, 0 }
  0x82   : > { %1281 = dma.done.wait (%p1708_p11), [#allocation6], 2048   ;;  %p1709_p8 = pmov %p1708_p11 }
  0x84   : > { %1283 = vsyncadd (%p1709_p8), [#allocation6], 4294965248  ;;  %p1710_p13 = pmov %p1709_p8 }
  0x85   : > { %p1711_p6 = pmov %p1709_p8 }
  0x86   : > { %1285 = dma.done.wait (%p1710_p13), [#allocation9], 1024  }
  0x87   : > { %1287 = vsyncadd (%p1711_p6), [#allocation9], 4294966272  ;;  %v393_v0 = vld [vmem:[%s345_s24] sm:$0xff]  ;;  %v1092_v1 = vld [vmem:[#allocation5] sm:$0xff]   ;;  %v1314_v2 = vmov 0.0   ;;  %v398_v4 = vlaneseq  ;;  %vm1315_vm1 = vmmov 0  }
  0x88   : > { %394 = vadd.xlane.f32.xlu0 %v393_v0  ;;  %951 = vmatprep.subr.bf16.mxu0 %v1314_v2  ;;  %v1093_v3 = vld [vmem:[#allocation5 + $0x8] sm:$0xff]   ;;  %v1094_v11 = vld [vmem:[#allocation5 + $0x10] sm:$0xff]   ;;  %v1095_v12 = vld [vmem:[#allocation5 + $0x18] sm:$0xff]   ;;  %s921_s20 = sshll.u32 %s1388_s13, 7  ;;  %s391_s29 = scalar_lea.vmem [#allocation10], %s886_s30 }
  0x89   : > { %971 = vmatprep.subr.bf16.mxu1 %v1314_v2  ;;  %952 = vmatpush3.bf16.msra.mxu0 %v1092_v1  ;;  %v399_v5 = vand.u32 127, %v398_v4  ;;  %v1096_v13 = vld [vmem:[#allocation5 + $0x20] sm:$0xff]   ;;  %v1097_v14 = vld [vmem:[#allocation5 + $0x28] sm:$0xff]   ;;  %v1098_v15 = vld [vmem:[#allocation5 + $0x30] sm:$0xff]   ;;  %s778_s24 = sshll.u32 %s391_s29, 4  ;;  %s1712_s18 = sld [smem:[#allocation17_spill]]  ;;  %s1637_s24 = int_to_ptr.vmem [resolvable:$true] %s778_s24 }
  0x8a   : > { %953 = vmatprep.subr.bf16.mxu0 %v1314_v2  ;;  %967 = vmatprep.mubr.msk.bf16.mxu0 %vm1315_vm1, %v1314_v2  ;;  %v1099_v16 = vld [vmem:[#allocation5 + $0x38] sm:$0xff]   ;;  %v1100_v17 = vld [vmem:[#allocation7] sm:$0xff]   ;;  %v1101_v18 = vld [vmem:[#allocation7 + $0x8] sm:$0xff]   ;;  %s765_s13 = scalar_lea.sflag [#allocation4], %s1566_s9  ;;  %s1232_s19 = scalar_lea.vmem %s1637_s24, 128 }
  0x8b   : > { %vm400_vm0 = vcmp.lt.s32.totalorder %v399_v5, 32  ;;  %987 = vmatprep.mubr.msk.bf16.mxu1 %vm1315_vm1, %v1314_v2  ;;  %972 = vmatpush3.bf16.msra.mxu1 %v1100_v17  ;;  %v1102_v19 = vld [vmem:[#allocation7 + $0x10] sm:$0xff]   ;;  %v1103_v20 = vld [vmem:[#allocation7 + $0x18] sm:$0xff]   ;;  %v1104_v21 = vld [vmem:[#allocation7 + $0x20] sm:$0xff]   ;;  %p1233_p10 = scmp.ne.s32.totalorder %s1637_s24, %s1232_s19  ;;  %s1316_s30 = smov [#allocation10]  }
  0x8c   : > { %973 = vmatprep.subr.bf16.mxu1 %v1314_v2  ;;  %v1105_v22 = vld [vmem:[#allocation7 + $0x28] sm:$0xff]   ;;  %v1106_v23 = vld [vmem:[#allocation7 + $0x30] sm:$0xff]   ;;  %v1107_v34 = vld [vmem:[#allocation7 + $0x38] sm:$0xff]   ;;  %s1236_s22 = sshll.u32 %s1316_s30, 4  ;;  %s1237_s22 = int_to_ptr.vmem [resolvable:$false] %s1236_s22 }
  0x8d   : > { %954 = vmatpush3.bf16.msra.mxu0 %v1093_v3  ;;  %v891_v28 = vld [vmem:[%s1680_s1] ss:$0 sm:$0xff]  ;;  %v1108_v35 = vld [vmem:[#allocation8] sm:$0xff]   ;;  %v1109_v36 = vld [vmem:[#allocation8 + $0x8] sm:$0xff]   ;;  %p1234_p3 = pnand %p1233_p10, %p1521_p5  ;;  %s1238_s25 = scalar_lea.vmem %s1237_s22, 256 }
  0x8e   : > { %955 = vmatprep.subr.bf16.mxu0 %v1314_v2  ;;  %v892_v30 = vld [vmem:[%s1681_s2] ss:$0 sm:$0xff]  ;;  %v1111_v38 = vld [vmem:[#allocation8 + $0x18] sm:$0xff]   ;;  %v1112_v39 = vld [vmem:[#allocation8 + $0x20] sm:$0xff]   ;;  %p1239_p12 = scmp.lt.s32.totalorder %s1637_s24, %s1237_s22  ;;  %p1240_p1 = scmp.lt.s32.totalorder %s1238_s25, %s1232_s19 }
  0x8f   : > { %974 = vmatpush3.bf16.msra.mxu1 %v1101_v18  ;;  %v1110_v37 = vld [vmem:[#allocation8 + $0x10] sm:$0xff]   ;;  %v1113_v40 = vld [vmem:[#allocation8 + $0x28] sm:$0xff]   ;;  %v1115_v49 = vld [vmem:[#allocation8 + $0x38] sm:$0xff]   ;;  %s1635_s23 = scalar_lea.hbm %s1712_s18, %s921_s20  ;;  %p1235_p7 = pneg %p1234_p3 }
  0x90   : > { %975 = vmatprep.subr.bf16.mxu1 %v1314_v2  ;;  %v893_v41 = vld [vmem:[%s1683_s4] ss:$0 sm:$0xff]  ;;  %p1241_p2 = por %p1240_p1, %p1239_p12 }
  0x91   : > { %956 = vmatpush3.bf16.msra.mxu0 %v1094_v11  ;;  %v1114_v48 = vld [vmem:[#allocation8 + $0x30] sm:$0xff]  }
  0x92   : > { %957 = vmatprep.subr.bf16.mxu0 %v1314_v2  ;;  %v902_v50 = vld [vmem:[%s1685_s6] ss:$0 sm:$0xff]  ;;  %p1242_p4 = pnand %p1241_p2, %p1235_p7 }
  0x93   : > { %976 = vmatpush3.bf16.msra.mxu1 %v1102_v19  ;;  %v911_v58 = vld [vmem:[%s1687_s8] ss:$0 sm:$0xff] }
  0x94   : > { %977 = vmatprep.subr.bf16.mxu1 %v1314_v2 }
  0x95   : > { %958 = vmatpush3.bf16.msra.mxu0 %v1095_v12 }
  0x96   : > { %959 = vmatprep.subr.bf16.mxu0 %v1314_v2 }
  0x97   : > { %978 = vmatpush3.bf16.msra.mxu1 %v1103_v20 }
  0x98   : > { %979 = vmatprep.subr.bf16.mxu1 %v1314_v2 }
  0x99   : > { %960 = vmatpush3.bf16.msra.mxu0 %v1096_v13 }
  0x9a   : > { %961 = vmatprep.subr.bf16.mxu0 %v1314_v2 }
  0x9b   : > { %980 = vmatpush3.bf16.msra.mxu1 %v1104_v21 }
  0x9c   : > { %981 = vmatprep.subr.bf16.mxu1 %v1314_v2 }
  0x9d   : > { %962 = vmatpush3.bf16.msra.mxu0 %v1097_v14 }
  0x9e   : > { %963 = vmatprep.subr.bf16.mxu0 %v1314_v2 }
  0x9f   : > { %982 = vmatpush3.bf16.msra.mxu1 %v1105_v22 }
  0xa0   : > { %983 = vmatprep.subr.bf16.mxu1 %v1314_v2 }
  0xa1   : > { %964 = vmatpush3.bf16.msra.mxu0 %v1098_v15 }
  0xa2   : > { %965 = vmatprep.subr.bf16.mxu0 %v1314_v2 }
  0xa3   : > { %984 = vmatpush3.bf16.msra.mxu1 %v1106_v23 }
  0xa4   : > { %985 = vmatprep.subr.bf16.mxu1 %v1314_v2 }
  0xa5   : > { %966 = vmatpush3.bf16.msra.mxu0 %v1099_v16 }
  0xa6   : > { %991 = vmatprep.subr.bf16.mxu0 %v1314_v2 }
  0xa7   : > { %986 = vmatpush3.bf16.msra.mxu1 %v1107_v34 }
 0x115   : > { %v395_v6 = vpop.xlane.xlu0 %394 }
 0x116   : > { %v396_v7 = vmul.f32 0.03125, %v395_v6 }
 0x118   : > { %v397_v8 = vsub.f32 %v393_v0, %v396_v7 }
 0x11a   : > { %v401_v9 = vsel %vm400_vm0, %v397_v8, 0.0 }
 0x11b   : > { %v402_v10 = vmul.f32 %v401_v9, %v401_v9 }
 0x11d   : > { %403 = vadd.xlane.f32.xlu0 %v402_v10 }
 0x1aa   : > { %v404_v24 = vpop.xlane.xlu0 %403 }
 0x1ab   : > { %v405_v25 = vmul.f32 0.03125, %v404_v24 }
 0x1ad   : > { %v406_v26 = vadd.f32 1e-05, %v405_v25 }
 0x1af   : > { %1116 = vrsqrt.f32 %v406_v26 }
 0x1b9   : > { %v1117_v27 = vpop.eup %1116 }
 0x1ba   : > { %v408_v29 = vmul.f32 %v1117_v27, %v401_v9 }
 0x1bc   : > { %v416_v31 = vmul.f32 %v891_v28, %v408_v29 }
 0x1be   : > { %v424_v32 = vadd.f32 %v892_v30, %v416_v31 }
 0x1c0   : > { %v425_v33 = vpack.c.bf16 %v424_v32, %v424_v32 }
 0x1c2   : > { %968 = vmatmul.mubr.bf16.vlgmr.msra.gmra.mrb[0].mxu0 %v425_v33 }
 0x1c3   : > { %1007 = vmatprep.mubr.msk.bf16.mxu0 %vm1315_vm1, %v1314_v2  ;;  %992 = vmatpush3.bf16.msra.mxu0 %v1108_v35 }
 0x1c4   : > { %993 = vmatprep.subr.bf16.mxu0 %v1314_v2 }
 0x1c7   : > { %994 = vmatpush3.bf16.msra.mxu0 %v1109_v36 }
 0x1c8   : > { %995 = vmatprep.subr.bf16.mxu0 %v1314_v2 }
 0x1cb   : > { %996 = vmatpush3.bf16.msra.mxu0 %v1110_v37 }
 0x1cc   : > { %997 = vmatprep.subr.bf16.mxu0 %v1314_v2 }
 0x1cf   : > { %998 = vmatpush3.bf16.msra.mxu0 %v1111_v38 }
 0x1d0   : > { %999 = vmatprep.subr.bf16.mxu0 %v1314_v2 }
 0x1d3   : > { %1000 = vmatpush3.bf16.msra.mxu0 %v1112_v39 }
 0x1d4   : > { %1001 = vmatprep.subr.bf16.mxu0 %v1314_v2 }
 0x1d7   : > { %1002 = vmatpush3.bf16.msra.mxu0 %v1113_v40 }
 0x1d8   : > { %1003 = vmatprep.subr.bf16.mxu0 %v1314_v2 }
 0x1db   : > { %1004 = vmatpush3.bf16.msra.mxu0 %v1114_v48 }
 0x1dc   : > { %1005 = vmatprep.subr.bf16.mxu0 %v1314_v2 }
 0x1df   : > { %1006 = vmatpush3.bf16.msra.mxu0 %v1115_v49 }
 0x295   : > { %v531_v42 = vpop.f32.mrb[0].mxu0 }
 0x296   : > { %v532_v43 = vadd.f32 %v893_v41, %v531_v42  ;;  %v969_v44 = vpop.f32.mrb[1].mxu0 }
 0x297   : > { %v534_v45 = vpop.f32.mrb[2].mxu0 }
 0x298   : > { %v537_v46 = vpack.c.bf16 %v532_v43, %v532_v43  ;;  %v970_v47 = vpop.f32.mrb[3].mxu0 }
 0x29a   : > { %988 = vmatmul.mubr.bf16.vlgmr.msra.gmra.mrb[0].mxu1 %v537_v46 }
 0x36d   : > { %v643_v51 = vpop.f32.mrb[0].mxu1 }
 0x36e   : > { %v644_v52 = vadd.f32 %v902_v50, %v643_v51  ;;  %v989_v53 = vpop.f32.mrb[1].mxu1 }
 0x36f   : > { %v646_v54 = vpop.f32.mrb[2].mxu1 }
 0x370   : > { %v649_v55 = vmax.f32 %v644_v52, 0.0  ;;  %v990_v56 = vpop.f32.mrb[3].mxu1 }
 0x372   : > { %v650_v57 = vpack.c.bf16 %v649_v55, %v649_v55 }
 0x374   : > { %1008 = vmatmul.mubr.bf16.vlgmr.msra.gmra.mrb[4].mxu0 %v650_v57 }
 0x447   : > { %v756_v59 = vpop.f32.mrb[4].mxu0 }
 0x448   : > { %v757_v60 = vadd.f32 %v911_v58, %v756_v59  ;;  %v1009_v61 = vpop.f32.mrb[5].mxu0 }
 0x449   : > { %v759_v62 = vpop.f32.mrb[6].mxu0 }
 0x44a   : > { %v762_v63 = vadd.f32 %v757_v60, %v532_v43  ;;  %v1010_v0 = vpop.f32.mrb[7].mxu0 }
 0x44c   : > { %763 = vst [vmem:[%s391_s29] sm:$0xff] %v762_v63 }
 0x44d   : > { %1245 = shalt.err (!%p1242_p4)
}
 0x44e   : > { %s1246_s9 = scalar_lea.hbm %s1635_s23, 128  ;;  %s1250_s21 = scalar_lea.hbm %s1712_s18, 256 }
 0x44f   : > { %p1247_p0 = scmp.ne.s32.totalorder %s1635_s23, %s1246_s9  ;;  %p1251_p8 = scmp.lt.u32.totalorder %s1635_s23, %s1712_s18 }
 0x450   : > { %p1252_p13 = scmp.lt.u32.totalorder %s1250_s21, %s1246_s9  ;;  %p1254_p10 = scmp.lt.u32.totalorder %s1246_s9, %s1635_s23 }
 0x451   : > { %p1248_p9 = pnand %p1247_p0, %p1521_p5 }
 0x452   : > { %p1253_p6 = por %p1252_p13, %p1251_p8 }
 0x453   : > { %p1249_p11 = pneg %p1248_p9 }
 0x454   : > { %p1255_p3 = por %p1254_p10, %p1253_p6 }
 0x456   : > { %p1256_p7 = pnand %p1255_p3, %p1249_p11 }
 0x458   : > { %1259 = shalt.err (!%p1256_p7)
}
 0x459   : > { %1025 = dma.vmem_to_hbm [thread:$0]  (%p1521_p5), %s1637_s24, 128, %s1635_s23, %s765_s13  }
 0x45a PF: > { %s1713_s15 = sld [smem:[#allocation15_spill]]  ;;  %s1714_s17 = sld [smem:[#allocation16_spill]] }
 0x45b   : > { %p1716_p1 = scmp.ge.s32.totalorder %s1306_s12, 2 }
 0x460   : > { %s790_s19 = sand.u32 1, %s1713_s15   ;;  %p1715_p12 = scmp.ne.s32.totalorder %s1714_s17, 0 }
 0x461   : > { %s791_s30 = scalar_lea.sflag [#allocation4], %s790_s19 }
 0x462   : > { %p1042_p2 = pnand %p1716_p1, %p1715_p12 }
 0x464   : > { %1289 = dma.done.wait (!%p1042_p2), %s791_s30, 128  }
 0x465   : > { %1291 = vsyncadd (!%p1042_p2), %s791_s30, 4294967168  ;;  %p24_p4 = scmp.ge.s32.totalorder %s1507_s14, 4   ;;  %s1717_s30 = smov %s1298_s10 }
 0x466   : > { %s1718_s10 = smov %s1302_s11  ;;  %s1719_s11 = smov %s1517_s16 }
 0x467   : > { %s1720_s12 = smov %s1507_s14  ;;  %26 = sbr.rel (!%p24_p4) target bundleno = 9 (0x9), region = 113 }
 0x46e   :  { %796 = vsyncpa [#allocation3], 1 }
 0x46f   :  { %798 = vsyncpa [#allocation3 + $0x1], 1 }
 0x470   :  { %799 = vsyncpa [#allocation6], 1 }
 0x471   :  { %800 = vsyncpa [#allocation9], 1 }
 0x472   :  { %801 = vsyncpa [#allocation4], 1 }
 0x473   :  { %803 = vsyncpa [#allocation4 + $0x1], 1 }

</bundles_post_ra>
